<compile_context>
chip_gen: v7x
topology: tpu7x:2x2x1
jax: 0.10.0
libtpu: 0.0.40
codegen_flags: <defaults>
</compile_context>

<pallas_src>
import numpy as np
import jax
import jax.numpy as jnp
from jax.experimental import pallas as pl
from jax.experimental.pallas import tpu as pltpu

_GELU_C = float(np.sqrt(2.0 / np.pi))
_LN_EPS = 1e-5  # standard LayerNorm epsilon


def _round_up(x, m):
    return ((x + m - 1) // m) * m


def _pffn_kernel(x_ref, w1_ref, b1_ref, w2_ref, b2_ref, g_ref, beta_ref,
                 o_ref, acc_ref):
    k = pl.program_id(1)
    nk = pl.num_programs(1)

    @pl.when(k == 0)
    def _():
        acc_ref[...] = jnp.zeros_like(acc_ref)

    # Dense(d_model -> d_inner chunk): native-dtype operands, f32 accumulation.
    x = x_ref[...]
    h = jnp.dot(x, w1_ref[...], preferred_element_type=jnp.float32)
    h = h + b1_ref[...].astype(jnp.float32)

    # GELU (tanh approximation) — elementwise, safe to apply per d_inner chunk.
    # TODO(synk): on v6e/v7x (bf16 VALU/EUP) this chain could run in bf16 when
    # the weights are bf16; kept in f32 so it is correct and fast on v5e too.
    h3 = h * (h * h)
    cdf = 0.5 * (1.0 + jnp.tanh(_GELU_C * (h + 0.044715 * h3)))
    h = h * cdf

    # Dense(d_inner chunk -> d_model), accumulated into resident f32 scratch.
    acc_ref[...] += jnp.dot(h.astype(w2_ref.dtype), w2_ref[...],
                            preferred_element_type=jnp.float32)

    @pl.when(k == nk - 1)
    def _():
        # bias + residual + LayerNorm epilogue, all in f32.
        z = (acc_ref[...] + b2_ref[...].astype(jnp.float32)
             + x_ref[...].astype(jnp.float32))
        mean = jnp.mean(z, axis=-1, keepdims=True)
        c = z - mean
        var = jnp.mean(c * c, axis=-1, keepdims=True)
        norm = c * jax.lax.rsqrt(var + _LN_EPS)
        out = (norm * g_ref[...].astype(jnp.float32)
               + beta_ref[...].astype(jnp.float32))
        o_ref[...] = out.astype(o_ref.dtype)


def _pick_k_tile(d_inner, max_k=1024):
    """d_inner chunk: multiple of 128, <= max_k, aiming for few (2-4) k steps."""
    d128 = _round_up(d_inner, 128)
    if d128 <= max_k:
        return d128
    for cand in (1024, 896, 768, 640, 512, 384, 256, 128):
        if cand <= max_k and d128 % cand == 0:
            return cand
    return max_k  # wrapper pads d_inner up to a multiple of k_tile anyway


def _vmem_bytes_estimate(tm, d_model, k_tile, x_bytes, w_bytes, out_bytes):
    """Tile footprint: double-buffered ins/outs + f32 accumulator scratch."""
    in_bufs = (tm * d_model * x_bytes          # x row tile
               + d_model * k_tile * w_bytes    # W1 chunk
               + k_tile * 4                    # b1 chunk
               + k_tile * d_model * w_bytes    # W2 chunk
               + 3 * d_model * 4)              # b2, gamma, beta
    out_bufs = tm * d_model * out_bytes
    acc = tm * d_model * 4
    return 2 * (in_bufs + out_bufs) + acc


def positionwise_ffn(x, w1, b1, w2, b2, gamma, beta, *,
                     tile_rows=512, k_tile=None, use_bf16_compute=False):
    """x: (..., d_model) -> (..., d_model)."""
    orig_shape = x.shape
    out_dtype = x.dtype
    d_model = orig_shape[-1]
    d_inner = w1.shape[-1]

    x2 = x.reshape(-1, d_model)
    n = x2.shape[0]

    if use_bf16_compute:
        # Half the weight-streaming HBM bytes + native bf16 MXU path.
        # Accumulation stays f32 inside the kernel (numerics tradeoff).
        x2 = x2.astype(jnp.bfloat16)
        w1 = w1.astype(jnp.bfloat16)
        w2 = w2.astype(jnp.bfloat16)

    # --- row tiling: big tiles amortize per-step overhead + W1/W2 streaming ---
    tm = _round_up(min(tile_rows, _round_up(max(n, 1), 8)), 8)
    if (n + tm - 1) // tm == 1 and tm > 8:
        # Split so the "parallel" row axis can feed both TensorCores.
        tm = _round_up((tm + 1) // 2, 8)
    n_pad = _round_up(n, tm)
    if n_pad != n:
        x2 = jnp.pad(x2, ((0, n_pad - n), (0, 0)))

    # --- d_inner tiling, zero-padded up to a multiple of k_tile ---
    if k_tile is None:
        k_tile = _pick_k_tile(d_inner)
    di_pad = _round_up(d_inner, k_tile)
    if di_pad != d_inner:
        # Padded W1 cols / b1 entries / W2 rows contribute exactly 0.
        w1 = jnp.pad(w1, ((0, 0), (0, di_pad - d_inner)))
        b1 = jnp.pad(b1, ((0, di_pad - d_inner),))
        w2 = jnp.pad(w2, ((0, di_pad - d_inner), (0, 0)))

    # biases / LN params as (1, D) rows so blocks are 2-D.
    b1r = b1.reshape(1, di_pad)
    b2r = b2.reshape(1, d_model)
    gr = gamma.reshape(1, d_model)
    br = beta.reshape(1, d_model)

    grid = (n_pad // tm, di_pad // k_tile)

    # Explicit scoped-VMEM limit (defaults: 16 MiB v5e / 32 MiB v6e,v7x).
    est = _vmem_bytes_estimate(tm, d_model, k_tile,
                               jnp.dtype(x2.dtype).itemsize,
                               jnp.dtype(w1.dtype).itemsize,
                               jnp.dtype(out_dtype).itemsize)
    vmem_limit = max(32 << 20, min(100 << 20, int(est * 1.5) + (4 << 20)))

    out = pl.pallas_call(
        _pffn_kernel,
        out_shape=jax.ShapeDtypeStruct((n_pad, d_model), out_dtype),
        grid_spec=pl.GridSpec(
            grid=grid,
            in_specs=[
                pl.BlockSpec((tm, d_model), lambda i, k: (i, 0)),       # x rows
                pl.BlockSpec((d_model, k_tile), lambda i, k: (0, k)),   # W1 chunk
                pl.BlockSpec((1, k_tile), lambda i, k: (0, k)),         # b1 chunk
                pl.BlockSpec((k_tile, d_model), lambda i, k: (k, 0)),   # W2 chunk
                pl.BlockSpec((1, d_model), lambda i, k: (0, 0)),        # b2
                pl.BlockSpec((1, d_model), lambda i, k: (0, 0)),        # gamma
                pl.BlockSpec((1, d_model), lambda i, k: (0, 0)),        # beta
            ],
            out_specs=pl.BlockSpec((tm, d_model), lambda i, k: (i, 0)),
            scratch_shapes=[pltpu.VMEM((tm, d_model), jnp.float32)],
        ),
        compiler_params=pltpu.CompilerParams(
            dimension_semantics=("parallel", "arbitrary"),
            vmem_limit_bytes=vmem_limit),
    )(x2, w1, b1r, w2, b2r, gr, br)

    if n_pad != n:
        out = out[:n]
    return out.reshape(orig_shape)


def init_params(key, d_model, d_inner, dtype=jnp.float32):
    """Deterministic init matching Dense.reset_parameters semantics."""
    k1, k2 = jax.random.split(key)
    std1 = np.sqrt(1.0 / float(d_model + d_inner))
    std2 = np.sqrt(1.0 / float(d_inner + d_model))
    w1 = (jax.random.normal(k1, (d_model, d_inner)) * std1).astype(dtype)
    b1 = jnp.zeros((d_inner,), dtype)
    w2 = (jax.random.normal(k2, (d_inner, d_model)) * std2).astype(dtype)
    b2 = jnp.zeros((d_model,), dtype)
    gamma = jnp.ones((d_model,), dtype)   # LayerNorm weight
    beta = jnp.zeros((d_model,), dtype)   # LayerNorm bias
    return w1, b1, w2, b2, gamma, beta


def _reference(x, w1, b1, w2, b2, gamma, beta):
    h = jnp.einsum("bsd,di->bsi", x, w1) + b1
    cdf = 0.5 * (1.0 + jnp.tanh(_GELU_C * (h + 0.044715 * h ** 3)))
    h = h * cdf
    y = jnp.einsum("bsi,id->bsd", h, w2) + b2
    z = x + y
    mean = jnp.mean(z, -1, keepdims=True)
    var = jnp.mean((z - mean) ** 2, -1, keepdims=True)
    return (z - mean) / jnp.sqrt(var + _LN_EPS) * gamma + beta


if __name__ == "__main__":
    key = jax.random.PRNGKey(0)
    kx, kp = jax.random.split(key)

    batch, seq, d_model, d_inner = 2, 8, 32, 64
    x = jax.random.normal(kx, (batch, seq, d_model), jnp.float32)
    w1, b1, w2, b2, gamma, beta = init_params(kp, d_model, d_inner)

    ref = _reference(x, w1, b1, w2, b2, gamma, beta)

    # f32 path: strict check against the pure-JAX reference.
    out = positionwise_ffn(x, w1, b1, w2, b2, gamma, beta)
    out = jax.block_until_ready(out)
    np.testing.assert_allclose(np.asarray(out), np.asarray(ref),
                               rtol=1e-5, atol=1e-5)

    # bf16 compute path (fast MXU / half HBM traffic): loose tolerance by design.
    out_bf16 = positionwise_ffn(x, w1, b1, w2, b2, gamma, beta,
                                use_bf16_compute=True)
    out_bf16 = jax.block_until_ready(out_bf16)
    np.testing.assert_allclose(np.asarray(out_bf16), np.asarray(ref),
                               rtol=1e-1, atol=1e-1)

    print("KERNEL_OK")
</pallas_src>

<mosaic_0001>
module attributes {stable_mosaic.version = 11 : i64} {
  func.func @_pffn_kernel(%arg0: i32, %arg1: i32, %arg2: memref<8x32xf32, #tpu.memory_space<vmem>>, %arg3: memref<32x128xf32, #tpu.memory_space<vmem>>, %arg4: memref<1x128xf32, #tpu.memory_space<vmem>>, %arg5: memref<128x32xf32, #tpu.memory_space<vmem>>, %arg6: memref<1x32xf32, #tpu.memory_space<vmem>>, %arg7: memref<1x32xf32, #tpu.memory_space<vmem>>, %arg8: memref<1x32xf32, #tpu.memory_space<vmem>>, %arg9: memref<8x32xf32, #tpu.memory_space<vmem>>, %arg10: memref<8x32xf32, #tpu.memory_space<vmem>>) attributes {dimension_semantics = [#tpu.dimension_semantics<parallel>, #tpu.dimension_semantics<arbitrary>], iteration_bounds = array<i64: 2, 1>, scalar_prefetch = 0 : i64, scratch_operands = 1 : i64, tpu.core_type = #tpu.core_type<tc>, window_params = [{transform_indices = @transform_0, window_bounds = array<i64: 8, 32>}, {transform_indices = @transform_1, window_bounds = array<i64: 32, 128>}, {transform_indices = @transform_2, window_bounds = array<i64: 1, 128>}, {transform_indices = @transform_3, window_bounds = array<i64: 128, 32>}, {pipeline_mode = #tpu.pipeline_mode<synchronous>, transform_indices = @transform_4, window_bounds = array<i64: 1, 32>}, {pipeline_mode = #tpu.pipeline_mode<synchronous>, transform_indices = @transform_5, window_bounds = array<i64: 1, 32>}, {pipeline_mode = #tpu.pipeline_mode<synchronous>, transform_indices = @transform_6, window_bounds = array<i64: 1, 32>}, {transform_indices = @transform_7, window_bounds = array<i64: 8, 32>}]} {
    %c0_i32 = arith.constant 0 : i32
    %0 = arith.cmpi eq, %arg1, %c0_i32 : i32
    %1 = arith.extui %0 : i1 to i32
    %c0_i32_0 = arith.constant 0 : i32
    %2 = arith.cmpi ne, %1, %c0_i32_0 : i32
    scf.if %2 {
      %cst_19 = arith.constant 0.000000e+00 : f32
      %30 = vector.broadcast %cst_19 : f32 to vector<8x32xf32>
      %c0_20 = arith.constant 0 : index
      %c0_21 = arith.constant 0 : index
      %31 = vector.load %arg10[%c0_20, %c0_21] : memref<8x32xf32, #tpu.memory_space<vmem>>, vector<8x32xf32>
      tpu.vector_store %arg10[%c0_20, %c0_21], %30 {strides = array<i32>} : memref<8x32xf32, #tpu.memory_space<vmem>>, vector<8x32xf32>,
    } else {
    }
    %c0 = arith.constant 0 : index
    %c0_1 = arith.constant 0 : index
    %3 = vector.load %arg2[%c0, %c0_1] : memref<8x32xf32, #tpu.memory_space<vmem>>, vector<8x32xf32>
    %c0_2 = arith.constant 0 : index
    %c0_3 = arith.constant 0 : index
    %4 = vector.load %arg3[%c0_2, %c0_3] : memref<32x128xf32, #tpu.memory_space<vmem>>, vector<32x128xf32>
    %cst = arith.constant dense<0.000000e+00> : vector<8x128xf32>
    %5 = tpu.matmul %3, %4, %cst {dimension_numbers = #tpu.dot_dimension_numbers<[1], [0], [0], [1], [0, 0, 1, 1], [], []>} : vector<8x32xf32>, vector<32x128xf32>, vector<8x128xf32> -> vector<8x128xf32>
    %c0_4 = arith.constant 0 : index
    %c0_5 = arith.constant 0 : index
    %6 = vector.load %arg4[%c0_4, %c0_5] : memref<1x128xf32, #tpu.memory_space<vmem>>, vector<1x128xf32>
    %7 = vector.broadcast %6 : vector<1x128xf32> to vector<8x128xf32>
    %8 = arith.addf %5, %7 : vector<8x128xf32>
    %9 = arith.mulf %8, %8 : vector<8x128xf32>
    %10 = arith.mulf %8, %9 : vector<8x128xf32>
    %cst_6 = arith.constant 4.471500e-02 : f32
    %11 = vector.broadcast %cst_6 : f32 to vector<8x128xf32>
    %12 = arith.mulf %11, %10 : vector<8x128xf32>
    %13 = arith.addf %8, %12 : vector<8x128xf32>
    %cst_7 = arith.constant 0.797884583 : f32
    %14 = vector.broadcast %cst_7 : f32 to vector<8x128xf32>
    %15 = arith.mulf %14, %13 : vector<8x128xf32>
    %16 = math.tanh %15 : vector<8x128xf32>
    %cst_8 = arith.constant 1.000000e+00 : f32
    %17 = vector.broadcast %cst_8 : f32 to vector<8x128xf32>
    %18 = arith.addf %17, %16 : vector<8x128xf32>
    %cst_9 = arith.constant 5.000000e-01 : f32
    %19 = vector.broadcast %cst_9 : f32 to vector<8x128xf32>
    %20 = arith.mulf %19, %18 : vector<8x128xf32>
    %21 = arith.mulf %8, %20 : vector<8x128xf32>
    %c0_10 = arith.constant 0 : index
    %c0_11 = arith.constant 0 : index
    %22 = vector.load %arg10[%c0_10, %c0_11] : memref<8x32xf32, #tpu.memory_space<vmem>>, vector<8x32xf32>
    %c0_12 = arith.constant 0 : index
    %c0_13 = arith.constant 0 : index
    %23 = vector.load %arg5[%c0_12, %c0_13] : memref<128x32xf32, #tpu.memory_space<vmem>>, vector<128x32xf32>
    %cst_14 = arith.constant dense<0.000000e+00> : vector<8x32xf32>
    %24 = tpu.matmul %21, %23, %cst_14 {dimension_numbers = #tpu.dot_dimension_numbers<[1], [0], [0], [1], [0, 0, 1, 1], [], []>} : vector<8x128xf32>, vector<128x32xf32>, vector<8x32xf32> -> vector<8x32xf32>
    %25 = arith.addf %22, %24 : vector<8x32xf32>
    %c0_15 = arith.constant 0 : index
    %c0_16 = arith.constant 0 : index
    %26 = vector.load %arg10[%c0_15, %c0_16] : memref<8x32xf32, #tpu.memory_space<vmem>>, vector<8x32xf32>
    tpu.vector_store %arg10[%c0_15, %c0_16], %25 {strides = array<i32>} : memref<8x32xf32, #tpu.memory_space<vmem>>, vector<8x32xf32>,
    %c0_i32_17 = arith.constant 0 : i32
    %27 = arith.cmpi eq, %arg1, %c0_i32_17 : i32
    %28 = arith.extui %27 : i1 to i32
    %c0_i32_18 = arith.constant 0 : i32
    %29 = arith.cmpi ne, %28, %c0_i32_18 : i32
    scf.if %29 {
      %c0_19 = arith.constant 0 : index
      %c0_20 = arith.constant 0 : index
      %30 = vector.load %arg10[%c0_19, %c0_20] : memref<8x32xf32, #tpu.memory_space<vmem>>, vector<8x32xf32>
      %c0_21 = arith.constant 0 : index
      %c0_22 = arith.constant 0 : index
      %31 = vector.load %arg6[%c0_21, %c0_22] : memref<1x32xf32, #tpu.memory_space<vmem>>, vector<1x32xf32>
      %32 = vector.broadcast %31 : vector<1x32xf32> to vector<8x32xf32>
      %33 = arith.addf %30, %32 : vector<8x32xf32>
      %c0_23 = arith.constant 0 : index
      %c0_24 = arith.constant 0 : index
      %34 = vector.load %arg2[%c0_23, %c0_24] : memref<8x32xf32, #tpu.memory_space<vmem>>, vector<8x32xf32>
      %35 = arith.addf %33, %34 : vector<8x32xf32>
      %cst_25 = arith.constant dense<0.000000e+00> : vector<8xf32>
      %36 = vector.multi_reduction <add>, %35, %cst_25 [1] : vector<8x32xf32> to vector<8xf32>
      %37 = vector.shape_cast %36 : vector<8xf32> to vector<8x1xf32>
      %cst_26 = arith.constant 3.200000e+01 : f32
      %38 = vector.broadcast %cst_26 : f32 to vector<8x1xf32>
      %39 = arith.divf %37, %38 : vector<8x1xf32>
      %40 = vector.broadcast %39 : vector<8x1xf32> to vector<8x32xf32>
      %41 = arith.subf %35, %40 : vector<8x32xf32>
      %42 = arith.mulf %41, %41 : vector<8x32xf32>
      %cst_27 = arith.constant dense<0.000000e+00> : vector<8xf32>
      %43 = vector.multi_reduction <add>, %42, %cst_27 [1] : vector<8x32xf32> to vector<8xf32>
      %44 = vector.shape_cast %43 : vector<8xf32> to vector<8x1xf32>
      %cst_28 = arith.constant 3.200000e+01 : f32
      %45 = vector.broadcast %cst_28 : f32 to vector<8x1xf32>
      %46 = arith.divf %44, %45 : vector<8x1xf32>
      %cst_29 = arith.constant 9.99999974E-6 : f32
      %47 = vector.broadcast %cst_29 : f32 to vector<8x1xf32>
      %48 = arith.addf %46, %47 : vector<8x1xf32>
      %49 = math.rsqrt %48 : vector<8x1xf32>
      %50 = vector.broadcast %49 : vector<8x1xf32> to vector<8x32xf32>
      %51 = arith.mulf %41, %50 : vector<8x32xf32>
      %c0_30 = arith.constant 0 : index
      %c0_31 = arith.constant 0 : index
      %52 = vector.load %arg7[%c0_30, %c0_31] : memref<1x32xf32, #tpu.memory_space<vmem>>, vector<1x32xf32>
      %53 = vector.broadcast %52 : vector<1x32xf32> to vector<8x32xf32>
      %54 = arith.mulf %51, %53 : vector<8x32xf32>
      %c0_32 = arith.constant 0 : index
      %c0_33 = arith.constant 0 : index
      %55 = vector.load %arg8[%c0_32, %c0_33] : memref<1x32xf32, #tpu.memory_space<vmem>>, vector<1x32xf32>
      %56 = vector.broadcast %55 : vector<1x32xf32> to vector<8x32xf32>
      %57 = arith.addf %54, %56 : vector<8x32xf32>
      %c0_34 = arith.constant 0 : index
      %c0_35 = arith.constant 0 : index
      %58 = vector.load %arg9[%c0_34, %c0_35] : memref<8x32xf32, #tpu.memory_space<vmem>>, vector<8x32xf32>
      tpu.vector_store %arg9[%c0_34, %c0_35], %57 {strides = array<i32>} : memref<8x32xf32, #tpu.memory_space<vmem>>, vector<8x32xf32>,
    } else {
    }
    return
  }
  func.func @transform_0(%arg0: i32, %arg1: i32) -> (i32, i32) {
    %c0_i32 = arith.constant 0 : i32
    %c0_i32_0 = arith.constant 0 : i32
    return %arg0, %c0_i32 : i32, i32
  }
  func.func @transform_1(%arg0: i32, %arg1: i32) -> (i32, i32) {
    %c0_i32 = arith.constant 0 : i32
    %c0_i32_0 = arith.constant 0 : i32
    return %c0_i32, %arg1 : i32, i32
  }
  func.func @transform_2(%arg0: i32, %arg1: i32) -> (i32, i32) {
    %c0_i32 = arith.constant 0 : i32
    %c0_i32_0 = arith.constant 0 : i32
    return %c0_i32, %arg1 : i32, i32
  }
  func.func @transform_3(%arg0: i32, %arg1: i32) -> (i32, i32) {
    %c0_i32 = arith.constant 0 : i32
    %c0_i32_0 = arith.constant 0 : i32
    return %arg1, %c0_i32 : i32, i32
  }
  func.func @transform_4(%arg0: i32, %arg1: i32) -> (i32, i32) {
    %c0_i32 = arith.constant 0 : i32
    %c0_i32_0 = arith.constant 0 : i32
    %c0_i32_1 = arith.constant 0 : i32
    return %c0_i32, %c0_i32_0 : i32, i32
  }
  func.func @transform_5(%arg0: i32, %arg1: i32) -> (i32, i32) {
    %c0_i32 = arith.constant 0 : i32
    %c0_i32_0 = arith.constant 0 : i32
    %c0_i32_1 = arith.constant 0 : i32
    return %c0_i32, %c0_i32_0 : i32, i32
  }
  func.func @transform_6(%arg0: i32, %arg1: i32) -> (i32, i32) {
    %c0_i32 = arith.constant 0 : i32
    %c0_i32_0 = arith.constant 0 : i32
    %c0_i32_1 = arith.constant 0 : i32
    return %c0_i32, %c0_i32_0 : i32, i32
  }
  func.func @transform_7(%arg0: i32, %arg1: i32) -> (i32, i32) {
    %c0_i32 = arith.constant 0 : i32
    %c0_i32_0 = arith.constant 0 : i32
    return %arg0, %c0_i32 : i32, i32
  }
}

</mosaic_0001>

<bundles_post_ra>
// kernel: tpu_custom_call.1
= control target key start
LH: loop header
LB: loop body
LE: loop exit
PB: predicated region body
PF: predicated region fallthrough
CT: control target
= control target key end

     0   :  { %12 = vsyncpa [#allocation4], 0  ;;  %s1190_s0 = inlined_call_operand.vmem [shape: f32[16,32], index: 0, kind: input, shape index: {}]   ;;  %s1191_s1 = inlined_call_operand.vmem [shape: f32[32,128], index: 1, kind: input, shape index: {}]   ;;  %s1192_s2 = inlined_call_operand.vmem [shape: f32[1,128], index: 2, kind: input, shape index: {}]   ;;  %s1193_s3 = inlined_call_operand.vmem [shape: f32[128,32], index: 3, kind: input, shape index: {}]   ;;  %s1194_s4 = inlined_call_operand.vmem [shape: f32[1,32], index: 4, kind: input, shape index: {}]   ;;  %s1195_s5 = inlined_call_operand.vmem [shape: f32[1,32], index: 5, kind: input, shape index: {}]   ;;  %s1196_s6 = inlined_call_operand.vmem [shape: f32[1,32], index: 6, kind: input, shape index: {}]   ;;  %s1197_s7 = inlined_call_operand.hbm [shape: f32[16,32], index: 7, kind: output, shape index: {}]  }
   0x1   :  { %14 = vsyncpa [#allocation4 + $0x1], 0  ;;  %s1000_s24 = smov 0   ;;  %s1002_s25 = smov 0  }
   0x2   :  { %s1004_s26 = smov 0   ;;  %s1006_s27 = smov 0  }
   0x3   :  { %s1008_s28 = smov 0   ;;  %s1010_s29 = smov 0  }
   0x4 LB: > { %s697_s30 = sadd.s32 4294967295, %s954_s29   ;;  %s698_s8 = sadd.s32 4294967294, %s954_s29   ;;  %s954_s29 = sphi %s1010_s29, %s20_s29   ;;  %s950_s28 = sphi %s1008_s28, %s1204_s28   ;;  %s946_s27 = sphi %s1006_s27, %s1203_s27   ;;  %s942_s26 = sphi %s1004_s26, %s1202_s26   ;;  %s938_s25 = sphi %s1002_s25, %s1201_s25   ;;  %s934_s24 = sphi %s1000_s24, %s1200_s24  }
   0x5   : > { %s32_s9 = sadd.s32 1, %s950_s28  ;;  %s206_s10 = sadd.s32 1, %s942_s26 }
   0x6   : > { %p34_p0 = scmp.ge.s32.totalorder %s32_s9, 2  ;;  %p216_p1 = scmp.ne.s32.totalorder %s942_s26, %s938_s25 }
   0x7   : > { %p217_p2 = scmp.eq.s32.totalorder %s697_s30, 1  ;;  %p222_p3 = scmp.ne.s32.totalorder %s938_s25, %s934_s24 }
   0x8   : > { %s1206_s9 = smov (%p34_p0, %s32_s9), 0  ;;  %p223_p5 = scmp.eq.s32.totalorder %s698_s8, 1 }
   0x9   : > { %p1040_p4 = por %p217_p2, %p216_p1  ;;  %s203_s12 = ssub.s32 %s950_s28, %s1206_s9 }
   0xa   : > { %p704_p6 = scmp.ge.s32.totalorder %s954_s29, 1  ;;  %p204_p7 = scmp.eq.s32.totalorder %s203_s12, 0 }
   0xb   : > { %p1047_p8 = por %p223_p5, %p222_p3  ;;  %p279_p9 = scmp.lt.s32.totalorder %s954_s29, 3 }
   0xc   : > { %s1053_s14 = scalar_select %p204_p7, %s942_s26, %s206_s10  }
   0xd   : > { %p280_p10 = pnand %p704_p6, %p279_p9 }
   0xe   : > { %v346_v0 = vld [vmem:[%s1191_s1] sm:$0xff] (!%p280_p10)  ;;  %v347_v1 = vld [vmem:[%s1191_s1 + $0x8] sm:$0xff] (!%p280_p10)  ;;  %v348_v2 = vld [vmem:[%s1191_s1 + $0x10] sm:$0xff] (!%p280_p10)  ;;  %vm343_vm0 = vcmask (!%p280_p10), 261120   ;;  %v956_v3 = vmov (!%p280_p10), 0.0|0.0   ;;  %v957_v6 = vmov (!%p280_p10), 0.0  }
   0xf   : > { %283 = sbr.rel (%p280_p10) target bundleno = 821 (0x335), region = 48  ;;  %784 = vmatprep.subr.bf16.mxu0 (!%p280_p10), %v956_v3  ;;  %v785_v4 = vpack.c.bf16 (!%p280_p10), %v347_v1, %v346_v0  ;;  %v349_v5 = vld [vmem:[%s1191_s1 + $0x18] sm:$0xff] (!%p280_p10)  ;;  %344 = vst.msk [vmem:[#allocation2] sm:$0xff] (!%p280_p10), %vm343_vm0, %v957_v6  ;;  %p322_p11 = scmp.lt.s32.totalorder (!%p280_p10), %s946_s27, 1  ;;  %790 = vmatprep.subr.bf16.mxu1 (!%p280_p10), %v956_v3  ;;  %v441_v7 = vld [vmem:[%s1193_s3] sm:$0xff] (!%p280_p10)  ;;  %v442_v8 = vld [vmem:[%s1193_s3 + $0x8] sm:$0xff] (!%p280_p10) }
  0x10   : > { %vm958_vm1 = vmmov (!%p280_p10), 0   ;;  %v791_v9 = vpack.c.bf16 (!%p280_p10), %v442_v8, %v441_v7  ;;  %v788_v10 = vpack.c.bf16 (!%p280_p10), %v349_v5, %v348_v2  ;;  %v443_v12 = vld [vmem:[%s1193_s3 + $0x10] sm:$0xff] (!%p280_p10)  ;;  %v444_v13 = vld [vmem:[%s1193_s3 + $0x18] sm:$0xff] (!%p280_p10)  ;;  %v445_v15 = vld [vmem:[%s1193_s3 + $0x20] sm:$0xff] (!%p280_p10)  ;;  %s319_s8 = sand.u32 (!%p280_p10), 1, %s938_s25  }
  0x11   : > { %746 = vmatprep.mubr.msk.f32.mxu0 (!%p280_p10), %vm958_vm1, %v957_v6  ;;  %781 = vmatprep.mubr.msk.f32.mxu1 (!%p280_p10), %vm958_vm1, %v957_v6  ;;  %v794_v14 = vpack.c.bf16 (!%p280_p10), %v444_v13, %v443_v12  ;;  %v446_v16 = vld [vmem:[%s1193_s3 + $0x28] sm:$0xff] (!%p280_p10)  ;;  %v447_v18 = vld [vmem:[%s1193_s3 + $0x30] sm:$0xff] (!%p280_p10)  ;;  %v448_v19 = vld [vmem:[%s1193_s3 + $0x38] sm:$0xff] (!%p280_p10)  ;;  %s705_s10 = sshll.u32 (!%p280_p10), %s319_s8, 3  ;;  %s575_s30 = scalar_lea.sflag (!%p280_p10), [#allocation4], %s319_s8 }
  0x12   : > { %786 = vmatpush3.bf16.msra.mxu0 (!%p280_p10), %v785_v4  ;;  %792 = vmatpush3.bf16.msra.mxu1 (!%p280_p10), %v791_v9  ;;  %v797_v17 = vpack.c.bf16 (!%p280_p10), %v446_v16, %v445_v15  ;;  %v800_v20 = vpack.c.bf16 (!%p280_p10), %v448_v19, %v447_v18  ;;  %v449_v21 = vld [vmem:[%s1193_s3 + $0x40] sm:$0xff] (!%p280_p10)  ;;  %v450_v22 = vld [vmem:[%s1193_s3 + $0x48] sm:$0xff] (!%p280_p10)  ;;  %v451_v24 = vld [vmem:[%s1193_s3 + $0x50] sm:$0xff] (!%p280_p10)  ;;  %s321_s19 = scalar_lea.vmem (!%p280_p10), [#allocation3], %s705_s10 }
  0x13   : > { %787 = vmatprep.subr.bf16.mxu0 (!%p280_p10), %v956_v3  ;;  %793 = vmatprep.subr.bf16.mxu1 (!%p280_p10), %v956_v3  ;;  %v803_v23 = vpack.c.bf16 (!%p280_p10), %v450_v22, %v449_v21  ;;  %v452_v25 = vld [vmem:[%s1193_s3 + $0x58] sm:$0xff] (!%p280_p10)  ;;  %v453_v27 = vld [vmem:[%s1193_s3 + $0x60] sm:$0xff] (!%p280_p10)  ;;  %v454_v28 = vld [vmem:[%s1193_s3 + $0x68] sm:$0xff] (!%p280_p10)  ;;  %s588_s20 = sshll.u32 (!%p280_p10), %s321_s19, 4  ;;  %s1144_s20 = int_to_ptr.vmem [resolvable:$true] %s588_s20 }
  0x14   : > { %v806_v26 = vpack.c.bf16 (!%p280_p10), %v452_v25, %v451_v24  ;;  %v809_v29 = vpack.c.bf16 (!%p280_p10), %v454_v28, %v453_v27  ;;  %v455_v30 = vld [vmem:[%s1193_s3 + $0x70] sm:$0xff] (!%p280_p10)  ;;  %v456_v31 = vld [vmem:[%s1193_s3 + $0x78] sm:$0xff] (!%p280_p10)  ;;  %v707_v33 = vld [vmem:[%s1192_s2] ss:$0 sm:$0xff] (!%p280_p10) }
  0x15   : > { %v812_v32 = vpack.c.bf16 (!%p280_p10), %v456_v31, %v455_v30  ;;  %v709_v50 = vld [vmem:[%s1194_s4] ss:$0 sm:$0xff] (!%p280_p10) }
  0x16   : > { %s323_s12 = scalar_select %p322_p11, %s946_s27, 1  ;;  %789 = vmatpush3.bf16.msra.mxu0 %v788_v10  ;;  %795 = vmatpush3.bf16.msra.mxu1 %v794_v14  ;;  %v440_v46 = vld [vmem:[#allocation2] sm:$0xff] }
  0x17   : > { %796 = vmatprep.subr.bf16.mxu1 %v956_v3  ;;  %v710_v0 = vld [vmem:[%s1195_s5] ss:$0 sm:$0xff] }
  0x18   : > { %s706_s15 = sshll.u32 %s323_s12, 3  ;;  %v711_v2 = vld [vmem:[%s1196_s6] ss:$0 sm:$0xff]  ;;  %s876_s12 = scalar_lea.vmem %s1144_s20, 128 }
  0x19   : > { %s325_s18 = scalar_lea.vmem %s1190_s0, %s706_s15  ;;  %p877_p12 = scmp.ne.s32.totalorder %s1144_s20, %s876_s12 }
  0x1a   : > { %v345_v11 = vld [vmem:[%s325_s18] sm:$0xff]  ;;  %798 = vmatpush3.bf16.msra.mxu1 %v797_v17  ;;  %s713_s18 = sshll.u32 %s946_s27, 7  ;;  %s959_s27 = smov [#allocation3]  }
  0x1b   : > { %747 = vmatmul.mubr.msk.f32.vlgmr.msra.gmra.mrb[0].mxu0 %vm343_vm0, %v345_v11  ;;  %799 = vmatprep.subr.bf16.mxu1 %v956_v3  ;;  %s1142_s23 = scalar_lea.hbm %s1197_s7, %s713_s18  ;;  %p878_p13 = pnand %p877_p12, %p1040_p4 }
  0x1c   : > { %s880_s10 = sshll.u32 %s959_s27, 4  ;;  %s881_s10 = int_to_ptr.vmem [resolvable:$false] %s880_s10 }
  0x1d   : > { %p879_p0 = pneg %p878_p13  ;;  %s882_s15 = scalar_lea.vmem %s881_s10, 256 }
  0x1e   : > { %801 = vmatpush3.bf16.msra.mxu1 %v800_v20  ;;  %p883_p1 = scmp.lt.s32.totalorder %s1144_s20, %s881_s10  ;;  %p884_p2 = scmp.lt.s32.totalorder %s882_s15, %s876_s12 }
  0x1f   : > { %802 = vmatprep.subr.bf16.mxu1 %v956_v3 }
  0x20   : > { %p885_p3 = por %p884_p2, %p883_p1 }
  0x22   : > { %804 = vmatpush3.bf16.msra.mxu1 %v803_v23  ;;  %p886_p5 = pnand %p885_p3, %p879_p0 }
  0x23   : > { %805 = vmatprep.subr.bf16.mxu1 %v956_v3 }
  0x26   : > { %807 = vmatpush3.bf16.msra.mxu1 %v806_v26 }
  0x27   : > { %808 = vmatprep.subr.bf16.mxu1 %v956_v3 }
  0x2a   : > { %810 = vmatpush3.bf16.msra.mxu1 %v809_v29 }
  0x2b   : > { %811 = vmatprep.subr.bf16.mxu1 %v956_v3 }
  0x2e   : > { %813 = vmatpush3.bf16.msra.mxu1 %v812_v32 }
  0xee   : > { %v427_v34 = vpop.f32.mrb[0].mxu0 }
  0xef   : > { %v428_v35 = vadd.f32 %v707_v33, %v427_v34  ;;  %v748_v36 = vpop.f32.mrb[1].mxu0 }
  0xf1   : > { %v431_v37 = vmul.f32 %v428_v35, %v428_v35 }
  0xf3   : > { %v432_v38 = vmul.f32 %v431_v37, %v428_v35 }
  0xf5   : > { %v433_v39 = vmul.f32 0.044715, %v432_v38 }
  0xf7   : > { %v434_v40 = vadd.f32 %v433_v39, %v428_v35 }
  0xf9   : > { %v435_v41 = vmul.f32 0.7978846, %v434_v40 }
  0xfb   : > { %872 = vtanh.f32 %v435_v41 }
 0x105   : > { %v873_v42 = vpop.eup %872 }
 0x106   : > { %v437_v43 = vadd.f32 1.0, %v873_v42 }
 0x108   : > { %v438_v44 = vmul.f32 0.5, %v437_v43 }
 0x10a   : > { %v439_v45 = vmul.f32 %v438_v44, %v428_v35 }
 0x10c   : > { %782 = vmatmul.mubr.f32.vlgmr.msra.gmra.mrb[0].mxu1 %v439_v45 }
 0x1df   : > { %v523_v47 = vpop.f32.mrb[0].mxu1 }
 0x1e0   : > { %v527_v48 = vadd.f32 %v523_v47, %v440_v46  ;;  %v783_v49 = vpop.f32.mrb[1].mxu1 }
 0x1e2   : > { %528 = vst.msk [vmem:[#allocation2] sm:$0xff] %vm343_vm0, %v527_v48 }
 0x1e9   : > { %v532_v51 = vld [vmem:[#allocation2] sm:$0xff] }
 0x1ea   : > { %v540_v52 = vadd.f32 %v709_v50, %v532_v51 }
 0x1ec   : > { %v542_v53 = vadd.f32 %v540_v52, %v345_v11 }
 0x1ee   : > { %v543_v54 = vsel %vm343_vm0, %v542_v53, 0.0 }
 0x1ef   : > { %544 = vadd.xlane.f32.xlu0 %v543_v54 }
 0x27c   : > { %v545_v55 = vpop.xlane.xlu0 %544 }
 0x27d   : > { %v547_v56 = vmul.f32 0.03125, %v545_v55 }
 0x27f   : > { %v548_v57 = vsub.f32 %v542_v53, %v547_v56 }
 0x281   : > { %v549_v58 = vmul.f32 %v548_v57, %v548_v57 }
 0x283   : > { %v550_v59 = vsel %vm343_vm0, %v549_v58, 0.0 }
 0x284   : > { %551 = vadd.xlane.f32.xlu0 %v550_v59 }
 0x311   : > { %v552_v60 = vpop.xlane.xlu0 %551 }
 0x312   : > { %v553_v61 = vmul.f32 0.03125, %v552_v60 }
 0x314   : > { %v554_v62 = vadd.f32 1e-05, %v553_v61 }
 0x316   : > { %874 = vrsqrt.f32 %v554_v62 }
 0x320   : > { %v875_v63 = vpop.eup %874 }
 0x321   : > { %v556_v1 = vmul.f32 %v875_v63, %v548_v57 }
 0x323   : > { %v564_v3 = vmul.f32 %v710_v0, %v556_v1 }
 0x325   : > { %v572_v4 = vadd.f32 %v711_v2, %v564_v3 }
 0x327   : > { %573 = vst.msk [vmem:[%s321_s19] sm:$0xff] %vm343_vm0, %v572_v4 }
 0x328   : > { %889 = shalt.err (!%p886_p5)
}
 0x329   : > { %s890_s8 = scalar_lea.hbm %s1142_s23, 128  ;;  %s894_s18 = scalar_lea.hbm %s1197_s7, 256 }
 0x32a   : > { %p891_p6 = scmp.ne.s32.totalorder %s1142_s23, %s890_s8  ;;  %p895_p10 = scmp.lt.u32.totalorder %s1142_s23, %s1197_s7 }
 0x32b   : > { %p896_p11 = scmp.lt.u32.totalorder %s894_s18, %s890_s8  ;;  %p898_p13 = scmp.lt.u32.totalorder %s890_s8, %s1142_s23 }
 0x32c   : > { %p892_p7 = pnand %p891_p6, %p1040_p4 }
 0x32d   : > { %p897_p12 = por %p896_p11, %p895_p10 }
 0x32e   : > { %p893_p9 = pneg %p892_p7 }
 0x32f   : > { %p899_p0 = por %p898_p13, %p897_p12 }
 0x331   : > { %p900_p1 = pnand %p899_p0, %p893_p9 }
 0x333   : > { %903 = shalt.err (!%p900_p1)
}
 0x334   : > { %814 = dma.vmem_to_hbm [thread:$0]  (%p1040_p4), %s1144_s20, 128, %s1142_s23, %s575_s30  }
 0x335 PF: > { %p820_p2 = scmp.ge.s32.totalorder %s954_s29, 2  ;;  %s600_s22 = sand.u32 1, %s934_s24  }
 0x336   : > { %s601_s12 = scalar_lea.sflag [#allocation4], %s600_s22 }
 0x337   : > { %p817_p3 = pnand %p820_p2, %p1047_p8 }
 0x339   : > { %929 = dma.done.wait (!%p817_p3), %s601_s12, 128  }
 0x33a   : > { %931 = vsyncadd (!%p817_p3), %s601_s12, 4294967168  ;;  %s20_s29 = sadd.s32 1, %s954_s29   ;;  %s1200_s24 = smov %s938_s25 }
 0x33b   : > { %p17_p5 = scmp.ge.s32.totalorder %s20_s29, 4   ;;  %s1201_s25 = smov %s942_s26 }
 0x33c   : > { %s1202_s26 = smov %s1053_s14  ;;  %s1203_s27 = smov %s950_s28 }
 0x33d   : > { %s1204_s28 = smov %s1206_s9  ;;  %19 = sbr.rel (!%p17_p5) target bundleno = 4 (0x4), region = 100 }
 0x344   :  { %606 = vsyncpa [#allocation4], 1 }
 0x345   :  { %608 = vsyncpa [#allocation4 + $0x1], 1 }

</bundles_post_ra>
